<compile_context>
chip_gen: v7x
topology: tpu7x:2x2x1
jax: 0.10.0
libtpu: 0.0.40
codegen_flags: <defaults>
</compile_context>

<pallas_src>
import jax
import jax.numpy as jnp
from jax.experimental import pallas as pl
from jax.experimental.pallas import tpu as pltpu

SHOP_VOCAB = 60
ITEM_VOCAB = 22170
SHOP_EMB = 2
ITEM_EMB = 2
EMB_TOT = SHOP_EMB + ITEM_EMB
HIDDEN = 12
DENSE = 24
MAX_NORM = 2.0

# ---- packed weight-slab layout (rows x 128 lanes, f32; everything at lane 0)
_ROW_WIH = 0                 # (1, 4H)      W_ih^T (input_size == 1)
_ROW_B = 1                   # (1, 4H)      b_ih + b_hh
_ROW_B1 = 2                  # (1, DENSE)
_ROW_B2 = 3                  # (1, 1)
_ROW_WHH = 8                 # (H, 4H)      W_hh^T, gates fused on lanes
_ROW_W1E = 24                # (4, DENSE)   W1^T rows for [shop|item] embeddings
_ROW_W1H = 32                # (H, DENSE)   W1^T rows for the LSTM hidden state
_ROW_W2 = 48                 # (DENSE, 1)   W2^T
_SLAB_ROWS = 72              # multiple of 8
_SLAB_COLS = 128


def _clip_max_norm(e, max_norm):
    # torch.nn.Embedding(max_norm=2): rows whose L2 norm exceeds max_norm are
    # rescaled to max_norm (renorm uses norm + 1e-7 in the denominator).
    norm = jnp.sqrt(jnp.sum(e * e, axis=-1, keepdims=True))
    scale = jnp.where(norm > max_norm, max_norm / (norm + 1e-7), 1.0)
    return e * scale


def _round_up(x, m):
    return ((x + m - 1) // m) * m


def lstm_mlp_kernel(emb_ref, sales_ref, slab_ref, out_ref):
    H = HIDDEN
    H4 = 4 * H
    S = sales_ref.shape[1]

    sales = sales_ref[...]                                     # (Bb, S) lane-dense
    wih = slab_ref[_ROW_WIH:_ROW_WIH + 1, 0:H4]                # (1, 4H)
    bias = slab_ref[_ROW_B:_ROW_B + 1, 0:H4]                   # (1, 4H)
    whh = slab_ref[_ROW_WHH:_ROW_WHH + H, 0:H4]                # (H, 4H)

    # ---- t = 0: h = c = 0, so skip the h @ W_hh matmul and the f*c term.
    g = sales[:, 0:1] * wih + bias
    sig = jax.nn.sigmoid(g)
    tnh = jnp.tanh(g)
    i_g = sig[:, 0:H]
    g_g = tnh[:, 2 * H:3 * H]
    o_g = sig[:, 3 * H:4 * H]
    c = i_g * g_g
    h = o_g * jnp.tanh(c)

    # ---- fully unrolled recurrence (S static & small): one fused MXU matmul,
    # one sigmoid and one tanh over the fused (Bb, 4H) tile per step.
    # PyTorch gate order along the 4H axis is [i, f, g, o].
    for t in range(1, S):
        g = (sales[:, t:t + 1] * wih + bias
             + jnp.dot(h, whh, preferred_element_type=jnp.float32))
        sig = jax.nn.sigmoid(g)
        tnh = jnp.tanh(g)
        i_g = sig[:, 0:H]
        f_g = sig[:, H:2 * H]
        g_g = tnh[:, 2 * H:3 * H]
        o_g = sig[:, 3 * H:4 * H]
        c = f_g * c + i_g * g_g
        h = o_g * jnp.tanh(c)

    # ---- MLP head: relu(cat([shop_e, item_e, h]) @ W1^T + b1) @ W2^T + b2
    # with the concat expressed as two partial matmuls (row split of W1^T).
    w1e = slab_ref[_ROW_W1E:_ROW_W1E + EMB_TOT, 0:DENSE]       # (4, DENSE)
    w1h = slab_ref[_ROW_W1H:_ROW_W1H + H, 0:DENSE]             # (H, DENSE)
    b1 = slab_ref[_ROW_B1:_ROW_B1 + 1, 0:DENSE]                # (1, DENSE)
    w2 = slab_ref[_ROW_W2:_ROW_W2 + DENSE, 0:1]                # (DENSE, 1)
    b2 = slab_ref[_ROW_B2:_ROW_B2 + 1, 0:1]                    # (1, 1)

    y1 = (jnp.dot(emb_ref[...], w1e, preferred_element_type=jnp.float32)
          + jnp.dot(h, w1h, preferred_element_type=jnp.float32)
          + b1)
    y1 = jnp.maximum(y1, 0.0)
    out_ref[...] = jnp.dot(y1, w2, preferred_element_type=jnp.float32) + b2


def init_params(key):
    ks = jax.random.split(key, 10)
    k_lstm = 1.0 / jnp.sqrt(HIDDEN)
    params = {
        # embedding tables ~ N(0, 1), like PyTorch default
        "shop_table": jax.random.normal(ks[0], (SHOP_VOCAB, SHOP_EMB), jnp.float32),
        "item_table": jax.random.normal(ks[1], (ITEM_VOCAB, ITEM_EMB), jnp.float32),
        # LSTM params, uniform(-1/sqrt(H), 1/sqrt(H)), gate order [i, f, g, o]
        "weight_ih": jax.random.uniform(ks[2], (4 * HIDDEN, 1), jnp.float32, -k_lstm, k_lstm),
        "weight_hh": jax.random.uniform(ks[3], (4 * HIDDEN, HIDDEN), jnp.float32, -k_lstm, k_lstm),
        "bias_ih": jax.random.uniform(ks[4], (4 * HIDDEN,), jnp.float32, -k_lstm, k_lstm),
        "bias_hh": jax.random.uniform(ks[5], (4 * HIDDEN,), jnp.float32, -k_lstm, k_lstm),
        # linear_1: (DENSE, 16), linear_2: (1, DENSE)
        "w1": jax.random.uniform(ks[6], (DENSE, EMB_TOT + HIDDEN), jnp.float32, -0.25, 0.25),
        "b1": jax.random.uniform(ks[7], (DENSE,), jnp.float32, -0.25, 0.25),
        "w2": jax.random.uniform(ks[8], (1, DENSE), jnp.float32, -0.2, 0.2),
        "b2": jax.random.uniform(ks[9], (1,), jnp.float32, -0.2, 0.2),
    }
    return params


def prepare_kernel_slab(p):
    """Pack every small weight/bias into one (72, 128) f32 slab (single DMA)."""
    H4 = 4 * HIDDEN
    wih = p["weight_ih"].T.reshape(H4)                         # (4H,)
    b = (p["bias_ih"] + p["bias_hh"]).reshape(H4)              # (4H,)
    whh = p["weight_hh"].T                                     # (H, 4H)
    w1_t = p["w1"].T                                           # (16, DENSE)
    w1e = w1_t[:EMB_TOT]                                       # (4, DENSE)
    w1h = w1_t[EMB_TOT:]                                       # (H, DENSE)
    b1 = p["b1"].reshape(DENSE)
    w2 = p["w2"].T                                             # (DENSE, 1)
    b2 = p["b2"].reshape(())

    slab = jnp.zeros((_SLAB_ROWS, _SLAB_COLS), jnp.float32)
    slab = slab.at[_ROW_WIH, :H4].set(wih)
    slab = slab.at[_ROW_B, :H4].set(b)
    slab = slab.at[_ROW_B1, :DENSE].set(b1)
    slab = slab.at[_ROW_B2, 0].set(b2)
    slab = slab.at[_ROW_WHH:_ROW_WHH + HIDDEN, :H4].set(whh)
    slab = slab.at[_ROW_W1E:_ROW_W1E + EMB_TOT, :DENSE].set(w1e)
    slab = slab.at[_ROW_W1H:_ROW_W1H + HIDDEN, :DENSE].set(w1h)
    slab = slab.at[_ROW_W2:_ROW_W2 + DENSE, 0].set(w2[:, 0])
    return slab


def _tensorcores_per_device():
    # Best-effort TC count (2 on v7x, 1 on v5e/v6e). Conservative fallback: 1.
    try:
        n = getattr(jax.devices()[0], "num_cores", None)
        if n:
            return max(1, int(n))
    except Exception:
        pass
    return 1


@jax.jit
def network_forward(shop_idx, item_idx, sales, params):
    B = shop_idx.shape[0]
    S = sales.shape[0]

    # Embedding gathers + max_norm renorm (fuses with the XLA gather),
    # concatenated to one lane-dense (B, 4) tile for the kernel.
    shop_e = _clip_max_norm(jnp.take(params["shop_table"], shop_idx, axis=0), MAX_NORM)
    item_e = _clip_max_norm(jnp.take(params["item_table"], item_idx, axis=0), MAX_NORM)
    emb = jnp.concatenate([shop_e, item_e], axis=1)            # (B, 4)

    # Lane-dense time series: (S, B, 1) -> (B, S).
    sales_bs = jnp.transpose(sales[:, :, 0], (1, 0))

    slab = prepare_kernel_slab(params)

    # Batch tiling: block_b is a multiple of 8; split across TensorCores on
    # multi-core chips (v7x) once B >= 16, otherwise a single big block.
    tc = _tensorcores_per_device()
    if B <= 16 or tc <= 1:
        block_b = min(_round_up(B, 8), 512)
    else:
        block_b = min(_round_up(pl.cdiv(B, tc), 8), 512)
    b_pad = _round_up(B, block_b)
    if b_pad != B:
        emb = jnp.pad(emb, ((0, b_pad - B), (0, 0)))
        sales_bs = jnp.pad(sales_bs, ((0, b_pad - B), (0, 0)))
    grid = (b_pad // block_b,)

    out = pl.pallas_call(
        lstm_mlp_kernel,
        out_shape=jax.ShapeDtypeStruct((b_pad, 1), jnp.float32),
        grid=grid,
        in_specs=[pl.BlockSpec((block_b, EMB_TOT), lambda i: (i, 0)),
                  pl.BlockSpec((block_b, S), lambda i: (i, 0)),
                  pl.BlockSpec((_SLAB_ROWS, _SLAB_COLS), lambda i: (0, 0))],
        out_specs=pl.BlockSpec((block_b, 1), lambda i: (i, 0)),
        compiler_params=pltpu.CompilerParams(
            dimension_semantics=("parallel",)),
    )(emb, sales_bs, slab)
    return out[:B]


def reference_forward(shop_idx, item_idx, sales, params):
    """Pure-JAX reference replicating the PyTorch forward semantics."""
    shop_e = _clip_max_norm(jnp.take(params["shop_table"], shop_idx, axis=0), MAX_NORM)
    item_e = _clip_max_norm(jnp.take(params["item_table"], item_idx, axis=0), MAX_NORM)
    S, B, _ = sales.shape
    H = HIDDEN
    w_ih, w_hh = params["weight_ih"], params["weight_hh"]
    b = params["bias_ih"] + params["bias_hh"]
    h = jnp.zeros((B, H), jnp.float32)
    c = jnp.zeros((B, H), jnp.float32)
    for t in range(S):
        x_t = sales[t]                                         # (B, 1)
        gates = x_t @ w_ih.T + h @ w_hh.T + b                  # (B, 4H)
        i_g = jax.nn.sigmoid(gates[:, 0:H])
        f_g = jax.nn.sigmoid(gates[:, H:2 * H])
        g_g = jnp.tanh(gates[:, 2 * H:3 * H])
        o_g = jax.nn.sigmoid(gates[:, 3 * H:4 * H])
        c = f_g * c + i_g * g_g
        h = o_g * jnp.tanh(c)
    x = jnp.concatenate([shop_e, item_e, h], axis=1)           # (B, 16)
    y1 = jnp.maximum(x @ params["w1"].T + params["b1"], 0.0)
    return y1 @ params["w2"].T + params["b2"]


if __name__ == "__main__":
    B, S = 8, 8
    key = jax.random.PRNGKey(0)
    k_p, k_s, k_i, k_x = jax.random.split(key, 4)

    params = init_params(k_p)
    shop_idx = jax.random.randint(k_s, (B,), 0, SHOP_VOCAB, dtype=jnp.int32)
    item_idx = jax.random.randint(k_i, (B,), 0, ITEM_VOCAB, dtype=jnp.int32)
    sales = jax.random.normal(k_x, (S, B, 1), jnp.float32)

    out = network_forward(shop_idx, item_idx, sales, params)
    out = jax.block_until_ready(out)
    assert out.shape == (B, 1), out.shape

    ref = reference_forward(shop_idx, item_idx, sales, params)
    import numpy as np
    np.testing.assert_allclose(np.asarray(out), np.asarray(ref), rtol=1e-5, atol=1e-5)

    print("KERNEL_OK")
</pallas_src>

<mosaic_0001>
module attributes {stable_mosaic.version = 11 : i64} {
  func.func @lstm_mlp_kernel(%arg0: i32, %arg1: memref<8x4xf32, #tpu.memory_space<vmem>>, %arg2: memref<8x8xf32, #tpu.memory_space<vmem>>, %arg3: memref<72x128xf32, #tpu.memory_space<vmem>>, %arg4: memref<8x1xf32, #tpu.memory_space<vmem>>) attributes {dimension_semantics = [#tpu.dimension_semantics<parallel>], iteration_bounds = array<i64: 1>, scalar_prefetch = 0 : i64, scratch_operands = 0 : i64, tpu.core_type = #tpu.core_type<tc>, window_params = [{transform_indices = @transform_0, window_bounds = array<i64: 8, 4>}, {transform_indices = @transform_1, window_bounds = array<i64: 8, 8>}, {pipeline_mode = #tpu.pipeline_mode<synchronous>, transform_indices = @transform_2, window_bounds = array<i64: 72, 128>}, {transform_indices = @transform_3, window_bounds = array<i64: 8, 1>}]} {
    %c0 = arith.constant 0 : index
    %c0_0 = arith.constant 0 : index
    %0 = vector.load %arg2[%c0, %c0_0] : memref<8x8xf32, #tpu.memory_space<vmem>>, vector<8x8xf32>
    %c0_1 = arith.constant 0 : index
    %c0_2 = arith.constant 0 : index
    %1 = vector.load %arg3[%c0_1, %c0_2] : memref<72x128xf32, #tpu.memory_space<vmem>>, vector<1x48xf32>
    %c1 = arith.constant 1 : index
    %c0_3 = arith.constant 0 : index
    %2 = vector.load %arg3[%c1, %c0_3] : memref<72x128xf32, #tpu.memory_space<vmem>>, vector<1x48xf32>
    %c8 = arith.constant 8 : index
    %c0_4 = arith.constant 0 : index
    %3 = vector.load %arg3[%c8, %c0_4] : memref<72x128xf32, #tpu.memory_space<vmem>>, vector<12x48xf32>
    %4 = vector.extract_strided_slice %0 {offsets = [0, 0], sizes = [8, 1], strides = [1, 1]} : vector<8x8xf32> to vector<8x1xf32>
    %5 = vector.broadcast %4 : vector<8x1xf32> to vector<8x48xf32>
    %6 = vector.broadcast %1 : vector<1x48xf32> to vector<8x48xf32>
    %7 = arith.mulf %5, %6 : vector<8x48xf32>
    %8 = vector.broadcast %2 : vector<1x48xf32> to vector<8x48xf32>
    %9 = arith.addf %7, %8 : vector<8x48xf32>
    %10 = arith.negf %9 : vector<8x48xf32>
    %11 = math.exp %10 : vector<8x48xf32>
    %cst = arith.constant 1.000000e+00 : f32
    %12 = vector.broadcast %cst : f32 to vector<8x48xf32>
    %13 = arith.addf %12, %11 : vector<8x48xf32>
    %14 = arith.divf %12, %13 : vector<8x48xf32>
    %15 = math.tanh %9 : vector<8x48xf32>
    %16 = vector.extract_strided_slice %14 {offsets = [0, 0], sizes = [8, 12], strides = [1, 1]} : vector<8x48xf32> to vector<8x12xf32>
    %17 = vector.extract_strided_slice %15 {offsets = [0, 24], sizes = [8, 12], strides = [1, 1]} : vector<8x48xf32> to vector<8x12xf32>
    %18 = vector.extract_strided_slice %14 {offsets = [0, 36], sizes = [8, 12], strides = [1, 1]} : vector<8x48xf32> to vector<8x12xf32>
    %19 = arith.mulf %16, %17 : vector<8x12xf32>
    %20 = math.tanh %19 : vector<8x12xf32>
    %21 = arith.mulf %18, %20 : vector<8x12xf32>
    %22 = vector.extract_strided_slice %0 {offsets = [0, 1], sizes = [8, 1], strides = [1, 1]} : vector<8x8xf32> to vector<8x1xf32>
    %23 = vector.broadcast %22 : vector<8x1xf32> to vector<8x48xf32>
    %24 = vector.broadcast %1 : vector<1x48xf32> to vector<8x48xf32>
    %25 = arith.mulf %23, %24 : vector<8x48xf32>
    %26 = vector.broadcast %2 : vector<1x48xf32> to vector<8x48xf32>
    %27 = arith.addf %25, %26 : vector<8x48xf32>
    %cst_5 = arith.constant dense<0.000000e+00> : vector<8x48xf32>
    %28 = tpu.matmul %21, %3, %cst_5 {dimension_numbers = #tpu.dot_dimension_numbers<[1], [0], [0], [1], [0, 0, 1, 1], [], []>} : vector<8x12xf32>, vector<12x48xf32>, vector<8x48xf32> -> vector<8x48xf32>
    %29 = arith.addf %27, %28 : vector<8x48xf32>
    %30 = arith.negf %29 : vector<8x48xf32>
    %31 = math.exp %30 : vector<8x48xf32>
    %cst_6 = arith.constant 1.000000e+00 : f32
    %32 = vector.broadcast %cst_6 : f32 to vector<8x48xf32>
    %33 = arith.addf %32, %31 : vector<8x48xf32>
    %34 = arith.divf %32, %33 : vector<8x48xf32>
    %35 = math.tanh %29 : vector<8x48xf32>
    %36 = vector.extract_strided_slice %34 {offsets = [0, 0], sizes = [8, 12], strides = [1, 1]} : vector<8x48xf32> to vector<8x12xf32>
    %37 = vector.extract_strided_slice %34 {offsets = [0, 12], sizes = [8, 12], strides = [1, 1]} : vector<8x48xf32> to vector<8x12xf32>
    %38 = vector.extract_strided_slice %35 {offsets = [0, 24], sizes = [8, 12], strides = [1, 1]} : vector<8x48xf32> to vector<8x12xf32>
    %39 = vector.extract_strided_slice %34 {offsets = [0, 36], sizes = [8, 12], strides = [1, 1]} : vector<8x48xf32> to vector<8x12xf32>
    %40 = arith.mulf %37, %19 : vector<8x12xf32>
    %41 = arith.mulf %36, %38 : vector<8x12xf32>
    %42 = arith.addf %40, %41 : vector<8x12xf32>
    %43 = math.tanh %42 : vector<8x12xf32>
    %44 = arith.mulf %39, %43 : vector<8x12xf32>
    %45 = vector.extract_strided_slice %0 {offsets = [0, 2], sizes = [8, 1], strides = [1, 1]} : vector<8x8xf32> to vector<8x1xf32>
    %46 = vector.broadcast %45 : vector<8x1xf32> to vector<8x48xf32>
    %47 = vector.broadcast %1 : vector<1x48xf32> to vector<8x48xf32>
    %48 = arith.mulf %46, %47 : vector<8x48xf32>
    %49 = vector.broadcast %2 : vector<1x48xf32> to vector<8x48xf32>
    %50 = arith.addf %48, %49 : vector<8x48xf32>
    %cst_7 = arith.constant dense<0.000000e+00> : vector<8x48xf32>
    %51 = tpu.matmul %44, %3, %cst_7 {dimension_numbers = #tpu.dot_dimension_numbers<[1], [0], [0], [1], [0, 0, 1, 1], [], []>} : vector<8x12xf32>, vector<12x48xf32>, vector<8x48xf32> -> vector<8x48xf32>
    %52 = arith.addf %50, %51 : vector<8x48xf32>
    %53 = arith.negf %52 : vector<8x48xf32>
    %54 = math.exp %53 : vector<8x48xf32>
    %cst_8 = arith.constant 1.000000e+00 : f32
    %55 = vector.broadcast %cst_8 : f32 to vector<8x48xf32>
    %56 = arith.addf %55, %54 : vector<8x48xf32>
    %57 = arith.divf %55, %56 : vector<8x48xf32>
    %58 = math.tanh %52 : vector<8x48xf32>
    %59 = vector.extract_strided_slice %57 {offsets = [0, 0], sizes = [8, 12], strides = [1, 1]} : vector<8x48xf32> to vector<8x12xf32>
    %60 = vector.extract_strided_slice %57 {offsets = [0, 12], sizes = [8, 12], strides = [1, 1]} : vector<8x48xf32> to vector<8x12xf32>
    %61 = vector.extract_strided_slice %58 {offsets = [0, 24], sizes = [8, 12], strides = [1, 1]} : vector<8x48xf32> to vector<8x12xf32>
    %62 = vector.extract_strided_slice %57 {offsets = [0, 36], sizes = [8, 12], strides = [1, 1]} : vector<8x48xf32> to vector<8x12xf32>
    %63 = arith.mulf %60, %42 : vector<8x12xf32>
    %64 = arith.mulf %59, %61 : vector<8x12xf32>
    %65 = arith.addf %63, %64 : vector<8x12xf32>
    %66 = math.tanh %65 : vector<8x12xf32>
    %67 = arith.mulf %62, %66 : vector<8x12xf32>
    %68 = vector.extract_strided_slice %0 {offsets = [0, 3], sizes = [8, 1], strides = [1, 1]} : vector<8x8xf32> to vector<8x1xf32>
    %69 = vector.broadcast %68 : vector<8x1xf32> to vector<8x48xf32>
    %70 = vector.broadcast %1 : vector<1x48xf32> to vector<8x48xf32>
    %71 = arith.mulf %69, %70 : vector<8x48xf32>
    %72 = vector.broadcast %2 : vector<1x48xf32> to vector<8x48xf32>
    %73 = arith.addf %71, %72 : vector<8x48xf32>
    %cst_9 = arith.constant dense<0.000000e+00> : vector<8x48xf32>
    %74 = tpu.matmul %67, %3, %cst_9 {dimension_numbers = #tpu.dot_dimension_numbers<[1], [0], [0], [1], [0, 0, 1, 1], [], []>} : vector<8x12xf32>, vector<12x48xf32>, vector<8x48xf32> -> vector<8x48xf32>
    %75 = arith.addf %73, %74 : vector<8x48xf32>
    %76 = arith.negf %75 : vector<8x48xf32>
    %77 = math.exp %76 : vector<8x48xf32>
    %cst_10 = arith.constant 1.000000e+00 : f32
    %78 = vector.broadcast %cst_10 : f32 to vector<8x48xf32>
    %79 = arith.addf %78, %77 : vector<8x48xf32>
    %80 = arith.divf %78, %79 : vector<8x48xf32>
    %81 = math.tanh %75 : vector<8x48xf32>
    %82 = vector.extract_strided_slice %80 {offsets = [0, 0], sizes = [8, 12], strides = [1, 1]} : vector<8x48xf32> to vector<8x12xf32>
    %83 = vector.extract_strided_slice %80 {offsets = [0, 12], sizes = [8, 12], strides = [1, 1]} : vector<8x48xf32> to vector<8x12xf32>
    %84 = vector.extract_strided_slice %81 {offsets = [0, 24], sizes = [8, 12], strides = [1, 1]} : vector<8x48xf32> to vector<8x12xf32>
    %85 = vector.extract_strided_slice %80 {offsets = [0, 36], sizes = [8, 12], strides = [1, 1]} : vector<8x48xf32> to vector<8x12xf32>
    %86 = arith.mulf %83, %65 : vector<8x12xf32>
    %87 = arith.mulf %82, %84 : vector<8x12xf32>
    %88 = arith.addf %86, %87 : vector<8x12xf32>
    %89 = math.tanh %88 : vector<8x12xf32>
    %90 = arith.mulf %85, %89 : vector<8x12xf32>
    %91 = vector.extract_strided_slice %0 {offsets = [0, 4], sizes = [8, 1], strides = [1, 1]} : vector<8x8xf32> to vector<8x1xf32>
    %92 = vector.broadcast %91 : vector<8x1xf32> to vector<8x48xf32>
    %93 = vector.broadcast %1 : vector<1x48xf32> to vector<8x48xf32>
    %94 = arith.mulf %92, %93 : vector<8x48xf32>
    %95 = vector.broadcast %2 : vector<1x48xf32> to vector<8x48xf32>
    %96 = arith.addf %94, %95 : vector<8x48xf32>
    %cst_11 = arith.constant dense<0.000000e+00> : vector<8x48xf32>
    %97 = tpu.matmul %90, %3, %cst_11 {dimension_numbers = #tpu.dot_dimension_numbers<[1], [0], [0], [1], [0, 0, 1, 1], [], []>} : vector<8x12xf32>, vector<12x48xf32>, vector<8x48xf32> -> vector<8x48xf32>
    %98 = arith.addf %96, %97 : vector<8x48xf32>
    %99 = arith.negf %98 : vector<8x48xf32>
    %100 = math.exp %99 : vector<8x48xf32>
    %cst_12 = arith.constant 1.000000e+00 : f32
    %101 = vector.broadcast %cst_12 : f32 to vector<8x48xf32>
    %102 = arith.addf %101, %100 : vector<8x48xf32>
    %103 = arith.divf %101, %102 : vector<8x48xf32>
    %104 = math.tanh %98 : vector<8x48xf32>
    %105 = vector.extract_strided_slice %103 {offsets = [0, 0], sizes = [8, 12], strides = [1, 1]} : vector<8x48xf32> to vector<8x12xf32>
    %106 = vector.extract_strided_slice %103 {offsets = [0, 12], sizes = [8, 12], strides = [1, 1]} : vector<8x48xf32> to vector<8x12xf32>
    %107 = vector.extract_strided_slice %104 {offsets = [0, 24], sizes = [8, 12], strides = [1, 1]} : vector<8x48xf32> to vector<8x12xf32>
    %108 = vector.extract_strided_slice %103 {offsets = [0, 36], sizes = [8, 12], strides = [1, 1]} : vector<8x48xf32> to vector<8x12xf32>
    %109 = arith.mulf %106, %88 : vector<8x12xf32>
    %110 = arith.mulf %105, %107 : vector<8x12xf32>
    %111 = arith.addf %109, %110 : vector<8x12xf32>
    %112 = math.tanh %111 : vector<8x12xf32>
    %113 = arith.mulf %108, %112 : vector<8x12xf32>
    %114 = vector.extract_strided_slice %0 {offsets = [0, 5], sizes = [8, 1], strides = [1, 1]} : vector<8x8xf32> to vector<8x1xf32>
    %115 = vector.broadcast %114 : vector<8x1xf32> to vector<8x48xf32>
    %116 = vector.broadcast %1 : vector<1x48xf32> to vector<8x48xf32>
    %117 = arith.mulf %115, %116 : vector<8x48xf32>
    %118 = vector.broadcast %2 : vector<1x48xf32> to vector<8x48xf32>
    %119 = arith.addf %117, %118 : vector<8x48xf32>
    %cst_13 = arith.constant dense<0.000000e+00> : vector<8x48xf32>
    %120 = tpu.matmul %113, %3, %cst_13 {dimension_numbers = #tpu.dot_dimension_numbers<[1], [0], [0], [1], [0, 0, 1, 1], [], []>} : vector<8x12xf32>, vector<12x48xf32>, vector<8x48xf32> -> vector<8x48xf32>
    %121 = arith.addf %119, %120 : vector<8x48xf32>
    %122 = arith.negf %121 : vector<8x48xf32>
    %123 = math.exp %122 : vector<8x48xf32>
    %cst_14 = arith.constant 1.000000e+00 : f32
    %124 = vector.broadcast %cst_14 : f32 to vector<8x48xf32>
    %125 = arith.addf %124, %123 : vector<8x48xf32>
    %126 = arith.divf %124, %125 : vector<8x48xf32>
    %127 = math.tanh %121 : vector<8x48xf32>
    %128 = vector.extract_strided_slice %126 {offsets = [0, 0], sizes = [8, 12], strides = [1, 1]} : vector<8x48xf32> to vector<8x12xf32>
    %129 = vector.extract_strided_slice %126 {offsets = [0, 12], sizes = [8, 12], strides = [1, 1]} : vector<8x48xf32> to vector<8x12xf32>
    %130 = vector.extract_strided_slice %127 {offsets = [0, 24], sizes = [8, 12], strides = [1, 1]} : vector<8x48xf32> to vector<8x12xf32>
    %131 = vector.extract_strided_slice %126 {offsets = [0, 36], sizes = [8, 12], strides = [1, 1]} : vector<8x48xf32> to vector<8x12xf32>
    %132 = arith.mulf %129, %111 : vector<8x12xf32>
    %133 = arith.mulf %128, %130 : vector<8x12xf32>
    %134 = arith.addf %132, %133 : vector<8x12xf32>
    %135 = math.tanh %134 : vector<8x12xf32>
    %136 = arith.mulf %131, %135 : vector<8x12xf32>
    %137 = vector.extract_strided_slice %0 {offsets = [0, 6], sizes = [8, 1], strides = [1, 1]} : vector<8x8xf32> to vector<8x1xf32>
    %138 = vector.broadcast %137 : vector<8x1xf32> to vector<8x48xf32>
    %139 = vector.broadcast %1 : vector<1x48xf32> to vector<8x48xf32>
    %140 = arith.mulf %138, %139 : vector<8x48xf32>
    %141 = vector.broadcast %2 : vector<1x48xf32> to vector<8x48xf32>
    %142 = arith.addf %140, %141 : vector<8x48xf32>
    %cst_15 = arith.constant dense<0.000000e+00> : vector<8x48xf32>
    %143 = tpu.matmul %136, %3, %cst_15 {dimension_numbers = #tpu.dot_dimension_numbers<[1], [0], [0], [1], [0, 0, 1, 1], [], []>} : vector<8x12xf32>, vector<12x48xf32>, vector<8x48xf32> -> vector<8x48xf32>
    %144 = arith.addf %142, %143 : vector<8x48xf32>
    %145 = arith.negf %144 : vector<8x48xf32>
    %146 = math.exp %145 : vector<8x48xf32>
    %cst_16 = arith.constant 1.000000e+00 : f32
    %147 = vector.broadcast %cst_16 : f32 to vector<8x48xf32>
    %148 = arith.addf %147, %146 : vector<8x48xf32>
    %149 = arith.divf %147, %148 : vector<8x48xf32>
    %150 = math.tanh %144 : vector<8x48xf32>
    %151 = vector.extract_strided_slice %149 {offsets = [0, 0], sizes = [8, 12], strides = [1, 1]} : vector<8x48xf32> to vector<8x12xf32>
    %152 = vector.extract_strided_slice %149 {offsets = [0, 12], sizes = [8, 12], strides = [1, 1]} : vector<8x48xf32> to vector<8x12xf32>
    %153 = vector.extract_strided_slice %150 {offsets = [0, 24], sizes = [8, 12], strides = [1, 1]} : vector<8x48xf32> to vector<8x12xf32>
    %154 = vector.extract_strided_slice %149 {offsets = [0, 36], sizes = [8, 12], strides = [1, 1]} : vector<8x48xf32> to vector<8x12xf32>
    %155 = arith.mulf %152, %134 : vector<8x12xf32>
    %156 = arith.mulf %151, %153 : vector<8x12xf32>
    %157 = arith.addf %155, %156 : vector<8x12xf32>
    %158 = math.tanh %157 : vector<8x12xf32>
    %159 = arith.mulf %154, %158 : vector<8x12xf32>
    %160 = vector.extract_strided_slice %0 {offsets = [0, 7], sizes = [8, 1], strides = [1, 1]} : vector<8x8xf32> to vector<8x1xf32>
    %161 = vector.broadcast %160 : vector<8x1xf32> to vector<8x48xf32>
    %162 = vector.broadcast %1 : vector<1x48xf32> to vector<8x48xf32>
    %163 = arith.mulf %161, %162 : vector<8x48xf32>
    %164 = vector.broadcast %2 : vector<1x48xf32> to vector<8x48xf32>
    %165 = arith.addf %163, %164 : vector<8x48xf32>
    %cst_17 = arith.constant dense<0.000000e+00> : vector<8x48xf32>
    %166 = tpu.matmul %159, %3, %cst_17 {dimension_numbers = #tpu.dot_dimension_numbers<[1], [0], [0], [1], [0, 0, 1, 1], [], []>} : vector<8x12xf32>, vector<12x48xf32>, vector<8x48xf32> -> vector<8x48xf32>
    %167 = arith.addf %165, %166 : vector<8x48xf32>
    %168 = arith.negf %167 : vector<8x48xf32>
    %169 = math.exp %168 : vector<8x48xf32>
    %cst_18 = arith.constant 1.000000e+00 : f32
    %170 = vector.broadcast %cst_18 : f32 to vector<8x48xf32>
    %171 = arith.addf %170, %169 : vector<8x48xf32>
    %172 = arith.divf %170, %171 : vector<8x48xf32>
    %173 = math.tanh %167 : vector<8x48xf32>
    %174 = vector.extract_strided_slice %172 {offsets = [0, 0], sizes = [8, 12], strides = [1, 1]} : vector<8x48xf32> to vector<8x12xf32>
    %175 = vector.extract_strided_slice %172 {offsets = [0, 12], sizes = [8, 12], strides = [1, 1]} : vector<8x48xf32> to vector<8x12xf32>
    %176 = vector.extract_strided_slice %173 {offsets = [0, 24], sizes = [8, 12], strides = [1, 1]} : vector<8x48xf32> to vector<8x12xf32>
    %177 = vector.extract_strided_slice %172 {offsets = [0, 36], sizes = [8, 12], strides = [1, 1]} : vector<8x48xf32> to vector<8x12xf32>
    %178 = arith.mulf %175, %157 : vector<8x12xf32>
    %179 = arith.mulf %174, %176 : vector<8x12xf32>
    %180 = arith.addf %178, %179 : vector<8x12xf32>
    %181 = math.tanh %180 : vector<8x12xf32>
    %182 = arith.mulf %177, %181 : vector<8x12xf32>
    %c24 = arith.constant 24 : index
    %c0_19 = arith.constant 0 : index
    %183 = vector.load %arg3[%c24, %c0_19] : memref<72x128xf32, #tpu.memory_space<vmem>>, vector<4x24xf32>
    %c32 = arith.constant 32 : index
    %c0_20 = arith.constant 0 : index
    %184 = vector.load %arg3[%c32, %c0_20] : memref<72x128xf32, #tpu.memory_space<vmem>>, vector<12x24xf32>
    %c2 = arith.constant 2 : index
    %c0_21 = arith.constant 0 : index
    %185 = vector.load %arg3[%c2, %c0_21] : memref<72x128xf32, #tpu.memory_space<vmem>>, vector<1x24xf32>
    %c48 = arith.constant 48 : index
    %c0_22 = arith.constant 0 : index
    %186 = vector.load %arg3[%c48, %c0_22] : memref<72x128xf32, #tpu.memory_space<vmem>>, vector<24x1xf32>
    %c3 = arith.constant 3 : index
    %c0_23 = arith.constant 0 : index
    %187 = vector.load %arg3[%c3, %c0_23] : memref<72x128xf32, #tpu.memory_space<vmem>>, vector<1x1xf32>
    %c0_24 = arith.constant 0 : index
    %c0_25 = arith.constant 0 : index
    %188 = vector.load %arg1[%c0_24, %c0_25] : memref<8x4xf32, #tpu.memory_space<vmem>>, vector<8x4xf32>
    %cst_26 = arith.constant dense<0.000000e+00> : vector<8x24xf32>
    %189 = tpu.matmul %188, %183, %cst_26 {dimension_numbers = #tpu.dot_dimension_numbers<[1], [0], [0], [1], [0, 0, 1, 1], [], []>} : vector<8x4xf32>, vector<4x24xf32>, vector<8x24xf32> -> vector<8x24xf32>
    %cst_27 = arith.constant dense<0.000000e+00> : vector<8x24xf32>
    %190 = tpu.matmul %182, %184, %cst_27 {dimension_numbers = #tpu.dot_dimension_numbers<[1], [0], [0], [1], [0, 0, 1, 1], [], []>} : vector<8x12xf32>, vector<12x24xf32>, vector<8x24xf32> -> vector<8x24xf32>
    %191 = arith.addf %189, %190 : vector<8x24xf32>
    %192 = vector.broadcast %185 : vector<1x24xf32> to vector<8x24xf32>
    %193 = arith.addf %191, %192 : vector<8x24xf32>
    %cst_28 = arith.constant 0.000000e+00 : f32
    %194 = vector.broadcast %cst_28 : f32 to vector<8x24xf32>
    %195 = arith.maximumf %193, %194 : vector<8x24xf32>
    %cst_29 = arith.constant dense<0.000000e+00> : vector<8x1xf32>
    %196 = tpu.matmul %195, %186, %cst_29 {dimension_numbers = #tpu.dot_dimension_numbers<[1], [0], [0], [1], [0, 0, 1, 1], [], []>} : vector<8x24xf32>, vector<24x1xf32>, vector<8x1xf32> -> vector<8x1xf32>
    %197 = vector.broadcast %187 : vector<1x1xf32> to vector<8x1xf32>
    %198 = arith.addf %196, %197 : vector<8x1xf32>
    %c0_30 = arith.constant 0 : index
    %c0_31 = arith.constant 0 : index
    %199 = vector.load %arg4[%c0_30, %c0_31] : memref<8x1xf32, #tpu.memory_space<vmem>>, vector<8x1xf32>
    tpu.vector_store %arg4[%c0_30, %c0_31], %198 {strides = array<i32>} : memref<8x1xf32, #tpu.memory_space<vmem>>, vector<8x1xf32>,
    return
  }
  func.func @transform_0(%arg0: i32) -> (i32, i32) {
    %c0_i32 = arith.constant 0 : i32
    %c0_i32_0 = arith.constant 0 : i32
    return %arg0, %c0_i32 : i32, i32
  }
  func.func @transform_1(%arg0: i32) -> (i32, i32) {
    %c0_i32 = arith.constant 0 : i32
    %c0_i32_0 = arith.constant 0 : i32
    return %arg0, %c0_i32 : i32, i32
  }
  func.func @transform_2(%arg0: i32) -> (i32, i32) {
    %c0_i32 = arith.constant 0 : i32
    %c0_i32_0 = arith.constant 0 : i32
    %c0_i32_1 = arith.constant 0 : i32
    return %c0_i32, %c0_i32_0 : i32, i32
  }
  func.func @transform_3(%arg0: i32) -> (i32, i32) {
    %c0_i32 = arith.constant 0 : i32
    %c0_i32_0 = arith.constant 0 : i32
    return %arg0, %c0_i32 : i32, i32
  }
}

</mosaic_0001>

<bundles_post_ra>
// kernel: network_forward.1
= control target key start
LH: loop header
LB: loop body
LE: loop exit
PB: predicated region body
PF: predicated region fallthrough
CT: control target
= control target key end

     0   :  { %v1312_v0 = vmov 0   ;;  %vm64_vm0 = vcmask 1043456   ;;  %v1314_v16 = vmov 0.0|0.0   ;;  %vm1315_vm1 = vmmov 1   ;;  %s1318_s22 = smov 36   ;;  %s1320_s23 = smov 92   ;;  %s1525_s1 = inlined_call_operand.vmem [shape: f32[8,8], index: 1, kind: input, shape index: {}]   ;;  %s1526_s2 = inlined_call_operand.vmem [shape: f32[72,128], index: 2, kind: input, shape index: {}]   ;;  %s1527_s0 = inlined_call_operand.vmem [shape: f32[8,4], index: 0, kind: input, shape index: {}]   ;;  %s1528_s3 = inlined_call_operand.vmem [shape: f32[8,1], index: 3, kind: output, shape index: {}]  }
   0x1   :  { %1240 = vset.pattern.permute.xlu0 %v1312_v0  ;;  %v1352_v1 = vld [vmem:[%s1525_s1] sm:$0xff]  ;;  %s1313_s1 = smov 104   ;;  %v17_v14 = vld [vmem:[%s1526_s2 + $0x8] sm:$0xff]  ;;  %v18_v15 = vld [vmem:[%s1526_s2 + $0x10] sm:$0xf]  ;;  %1188 = vmatprep.subr.bf16.mxu0 %v1314_v16  ;;  %vm1316_vm3 = vmmov 0  }
   0x2   :  { %21 = vperm.xlu0 %1240, %v1352_v1   ;;  %v1358_v2 = vld [vmem:[%s1526_s2] ss:$0 sm:$0xff]  ;;  %v1363_v3 = vld [vmem:[%s1526_s2 + $0x1] ss:$0 sm:$0xff]  ;;  %v1375_v17 = vpack.c.bf16 %v18_v15, %v17_v14  ;;  %vm1378_vm2 = vmpackc.low %vm64_vm0, %vm1315_vm1  ;;  %1192 = vmatprep.subr.bf16.mxu1 %v1314_v16  ;;  %v1317_v19 = vmov 0.0   ;;  %v1319_v21 = vmov 1  }
   0x3   :  { %1122 = vmatprep.mubr.msk.f32.mxu0 %vm1316_vm3, %v1317_v19  ;;  %1129 = vmatprep.mubr.msk.f32.mxu1 %vm1316_vm3, %v1317_v19  ;;  %vm61_vm4 = vcmask 97280   ;;  %s1321_s24 = smov 12   ;;  %s1322_s25 = smov 24   ;;  %v1323_v43 = vmov 2   ;;  %v1324_v0 = vmov 3   ;;  %vm890_vm5 = vcmask 31744  }
   0x4   :  { %1191 = vmatpush3.bf16.msk.msra.mxu0 %vm1378_vm2, %v1375_v17  ;;  %1195 = vmatpush3.bf16.msk.msra.mxu1 %vm1378_vm2, %v1375_v17  ;;  %v807_v18 = vld [vmem:[%s1526_s2 + $0x30] sm:$0xff]  ;;  %vm977_vm6 = vcmask 195584   ;;  %vm1051_vm7 = vcmask 7168  }
   0x5   :  { %1196 = vmatprep.subr.bf16.mxu0 %v1314_v16  ;;  %1200 = vmatprep.subr.bf16.mxu1 %v1314_v16 }
   0x6   :  { %1241 = vset.pattern.permute.xlu0 %v1319_v21  ;;  %1242 = vset.pattern.permute.xlu1 %v1323_v43 }
  0x81   :  { %v22_v4 = vpop.permute.xlu0 %21 }
  0x82   :  { %v28_v5 = vmul.f32 %v1358_v2, %v22_v4 }
  0x84   :  { %v33_v6 = vadd.f32 %v1363_v3, %v28_v5 }
  0x86   :  { %1248 = vtanh.f32 %v33_v6  ;;  %v1059_v8 = vmul.f32 -1.442695, %v33_v6 }
  0x88   :  { %1250 = vpow2.f32 %v1059_v8 }
  0x90   :  { %v1249_v7 = vpop.eup %1248 }
  0x91   :  { %42 = vrot.lane.b32.xlu0 %v1249_v7, %s1313_s1 }
  0x92   :  { %v1251_v9 = vpop.eup %1250 }
  0x93   :  { %v37_v10 = vadd.f32 1.0, %v1251_v9 }
  0x95   :  { %1252 = vrcp.f32 %v37_v10  ;;  %53 = vperm.xlu0 %1241, %v1352_v1  }
  0x99   :  { %1243 = vset.pattern.permute.xlu0 %v1324_v0 }
  0x9f   :  { %v1253_v11 = vpop.eup %1252 }
 0x103   :  { %v43_v12 = vpop.permute.xlu0 %42 }
 0x104   :  { %v45_v13 = vmul.f32 %v1253_v11, %v43_v12 }
 0x106   :  { %1254 = vtanh.f32 %v45_v13 }
 0x110   :  { %v1255_v20 = vpop.eup %1254 }
 0x111   :  { %48 = vrot.lane.b32.xlu1 %v1255_v20, %s1318_s22 }
 0x114   :  { %v54_v25 = vpop.permute.xlu0 %53 }
 0x115   :  { %v56_v26 = vmul.f32 %v1358_v2, %v54_v25 }
 0x117   :  { %v57_v27 = vadd.f32 %v1363_v3, %v56_v26 }
 0x183   :  { %v49_v22 = vpop.permute.xlu1 %48 }
 0x184   :  { %v51_v23 = vmul.f32 %v1253_v11, %v49_v22 }
 0x186   :  { %59 = vrot.lane.b32.xlu1 %v51_v23, %s1320_s23 }
 0x1f8   :  { %v60_v24 = vpop.permute.xlu1 %59 }
 0x1f9   :  { %1123 = vmatmul.mubr.msk.f32.vlgmr.msra.gmra.mrb[0].mxu0 %vm61_vm4, %v60_v24 }
 0x1fa   :  { %1199 = vmatpush3.bf16.msk.msra.mxu0 %vm1378_vm2, %v1375_v17  ;;  %1136 = vmatprep.mubr.msk.f32.mxu0 %vm1316_vm3, %v1317_v19 }
 0x1fb   :  { %1204 = vmatprep.subr.bf16.mxu0 %v1314_v16 }
 0x2cc   :  { %v134_v28 = vpop.f32.mrb[0].mxu0 }
 0x2cd   :  { %v138_v29 = vadd.f32 %v134_v28, %v57_v27  ;;  %v1124_v30 = vpop.f32.mrb[1].mxu0  ;;  %v1325_v28 = vmov 4  }
 0x2cf   :  { %1256 = vtanh.f32 %v138_v29  ;;  %v1062_v32 = vmul.f32 -1.442695, %v138_v29 }
 0x2d1   :  { %1258 = vpow2.f32 %v1062_v32 }
 0x2d9   :  { %v1257_v31 = vpop.eup %1256 }
 0x2da   :  { %152 = vrot.lane.b32.xlu1 %v1257_v31, %s1313_s1 }
 0x2db   :  { %v1259_v33 = vpop.eup %1258 }
 0x2dc   :  { %v142_v34 = vadd.f32 1.0, %v1259_v33 }
 0x2de   :  { %147 = vrot.lane.b32.xlu1 %v45_v13, %s1321_s24  ;;  %1260 = vrcp.f32 %v142_v34 }
 0x2e8   :  { %v1261_v35 = vpop.eup %1260 }
 0x34c   :  { %v153_v36 = vpop.permute.xlu1 %152 }
 0x34d   :  { %v155_v37 = vmul.f32 %v1261_v35, %v153_v36 }
 0x34f   :  { %157 = vrot.lane.b32.xlu0 %v155_v37, %s1321_s24 }
 0x350   :  { %v148_v38 = vpop.permute.xlu1 %147 }
 0x351   :  { %v150_v39 = vmul.f32 %v1261_v35, %v148_v38 }
 0x3c1   :  { %v158_v40 = vpop.permute.xlu0 %157 }
 0x3c2   :  { %v160_v41 = vadd.f32 %v158_v40, %v150_v39 }
 0x3c4   :  { %1262 = vtanh.f32 %v160_v41 }
 0x3ce   :  { %v1263_v42 = vpop.eup %1262 }
 0x3cf   :  { %163 = vrot.lane.b32.xlu1 %v1263_v42, %s1322_s25 }
 0x3d3   :  { %168 = vperm.xlu1 %1242, %v1352_v1  }
 0x441   :  { %v164_v44 = vpop.permute.xlu1 %163 }
 0x442   :  { %v166_v45 = vmul.f32 %v1261_v35, %v164_v44 }
 0x444   :  { %174 = vrot.lane.b32.xlu0 %v166_v45, %s1320_s23 }
 0x452   :  { %v169_v47 = vpop.permute.xlu1 %168 }
 0x453   :  { %v171_v48 = vmul.f32 %v1358_v2, %v169_v47 }
 0x455   :  { %v172_v49 = vadd.f32 %v1363_v3, %v171_v48 }
 0x4b6   :  { %v175_v46 = vpop.permute.xlu0 %174 }
 0x4b7   :  { %1130 = vmatmul.mubr.msk.f32.vlgmr.msra.gmra.mrb[0].mxu1 %vm61_vm4, %v175_v46 }
 0x4b8   :  { %1203 = vmatpush3.bf16.msk.msra.mxu1 %vm1378_vm2, %v1375_v17  ;;  %1143 = vmatprep.mubr.msk.f32.mxu1 %vm1316_vm3, %v1317_v19 }
 0x4b9   :  { %1208 = vmatprep.subr.bf16.mxu1 %v1314_v16 }
 0x58a   :  { %v244_v50 = vpop.f32.mrb[0].mxu1 }
 0x58b   :  { %v248_v51 = vadd.f32 %v244_v50, %v172_v49  ;;  %v1131_v52 = vpop.f32.mrb[1].mxu1  ;;  %v1326_v49 = vmov 5  }
 0x58d   :  { %1264 = vtanh.f32 %v248_v51  ;;  %v1065_v54 = vmul.f32 -1.442695, %v248_v51 }
 0x58f   :  { %1266 = vpow2.f32 %v1065_v54 }
 0x597   :  { %v1265_v53 = vpop.eup %1264 }
 0x598   :  { %258 = vrot.lane.b32.xlu0 %v1265_v53, %s1313_s1 }
 0x599   :  { %v1267_v55 = vpop.eup %1266 }
 0x59a   :  { %v252_v56 = vadd.f32 1.0, %v1267_v55 }
 0x59c   :  { %1268 = vrcp.f32 %v252_v56 }
 0x5a6   :  { %v1269_v57 = vpop.eup %1268 }
 0x5a7   :  { %v256_v60 = vmul.f32 %v1269_v57, %v160_v41 }
 0x60a   :  { %v259_v58 = vpop.permute.xlu0 %258 }
 0x60b   :  { %v261_v59 = vmul.f32 %v1269_v57, %v259_v58 }
 0x60d   :  { %263 = vrot.lane.b32.xlu1 %v261_v59, %s1321_s24 }
 0x67f   :  { %v264_v61 = vpop.permute.xlu1 %263 }
 0x680   :  { %v266_v62 = vadd.f32 %v264_v61, %v256_v60 }
 0x682   :  { %1270 = vtanh.f32 %v266_v62 }
 0x68c   :  { %v1271_v63 = vpop.eup %1270 }
 0x68d   :  { %269 = vrot.lane.b32.xlu0 %v1271_v63, %s1322_s25 }
 0x691   :  { %274 = vperm.xlu0 %1243, %v1352_v1  }
 0x695   :  { %1244 = vset.pattern.permute.xlu0 %v1325_v28 }
 0x6ff   :  { %v270_v4 = vpop.permute.xlu0 %269 }
 0x700   :  { %v272_v5 = vmul.f32 %v1269_v57, %v270_v4 }
 0x702   :  { %280 = vrot.lane.b32.xlu1 %v272_v5, %s1320_s23 }
 0x710   :  { %v275_v7 = vpop.permute.xlu0 %274 }
 0x711   :  { %v277_v8 = vmul.f32 %v1358_v2, %v275_v7 }
 0x713   :  { %v278_v9 = vadd.f32 %v1363_v3, %v277_v8  ;;  %v1327_v8 = vmov 6  }
 0x774   :  { %v281_v6 = vpop.permute.xlu1 %280 }
 0x775   :  { %1137 = vmatmul.mubr.msk.f32.vlgmr.msra.gmra.mrb[2].mxu0 %vm61_vm4, %v281_v6 }
 0x776   :  { %1207 = vmatpush3.bf16.msk.msra.mxu0 %vm1378_vm2, %v1375_v17  ;;  %1150 = vmatprep.mubr.msk.f32.mxu0 %vm1316_vm3, %v1317_v19 }
 0x777   :  { %1212 = vmatprep.subr.bf16.mxu0 %v1314_v16 }
 0x848   :  { %v350_v10 = vpop.f32.mrb[2].mxu0 }
 0x849   :  { %v354_v11 = vadd.f32 %v350_v10, %v278_v9  ;;  %v1138_v12 = vpop.f32.mrb[3].mxu0 }
 0x84b   :  { %1272 = vtanh.f32 %v354_v11  ;;  %v1068_v14 = vmul.f32 -1.442695, %v354_v11 }
 0x84d   :  { %1274 = vpow2.f32 %v1068_v14 }
 0x855   :  { %v1273_v13 = vpop.eup %1272 }
 0x856   :  { %364 = vrot.lane.b32.xlu1 %v1273_v13, %s1313_s1 }
 0x857   :  { %v1275_v15 = vpop.eup %1274 }
 0x858   :  { %v358_v20 = vadd.f32 1.0, %v1275_v15 }
 0x85a   :  { %1276 = vrcp.f32 %v358_v20 }
 0x864   :  { %v1277_v21 = vpop.eup %1276 }
 0x865   :  { %v362_v24 = vmul.f32 %v1277_v21, %v266_v62 }
 0x8c8   :  { %v365_v22 = vpop.permute.xlu1 %364 }
 0x8c9   :  { %v367_v23 = vmul.f32 %v1277_v21, %v365_v22 }
 0x8cb   :  { %369 = vrot.lane.b32.xlu1 %v367_v23, %s1321_s24 }
 0x93d   :  { %v370_v25 = vpop.permute.xlu1 %369 }
 0x93e   :  { %v372_v26 = vadd.f32 %v370_v25, %v362_v24 }
 0x940   :  { %1278 = vtanh.f32 %v372_v26 }
 0x94a   :  { %v1279_v27 = vpop.eup %1278 }
 0x94b   :  { %375 = vrot.lane.b32.xlu0 %v1279_v27, %s1322_s25 }
 0x94f   :  { %380 = vperm.xlu0 %1244, %v1352_v1  }
 0x953   :  { %1245 = vset.pattern.permute.xlu0 %v1326_v49 }
 0x9bd   :  { %v376_v29 = vpop.permute.xlu0 %375 }
 0x9be   :  { %v378_v30 = vmul.f32 %v1277_v21, %v376_v29 }
 0x9c0   :  { %386 = vrot.lane.b32.xlu1 %v378_v30, %s1320_s23 }
 0x9ce   :  { %v381_v32 = vpop.permute.xlu0 %380 }
 0x9cf   :  { %v383_v33 = vmul.f32 %v1358_v2, %v381_v32 }
 0x9d1   :  { %v384_v34 = vadd.f32 %v1363_v3, %v383_v33  ;;  %v1328_v33 = vmov 7  }
 0xa32   :  { %v387_v31 = vpop.permute.xlu1 %386 }
 0xa33   :  { %1144 = vmatmul.mubr.msk.f32.vlgmr.msra.gmra.mrb[2].mxu1 %vm61_vm4, %v387_v31 }
 0xa34   :  { %1211 = vmatpush3.bf16.msk.msra.mxu1 %vm1378_vm2, %v1375_v17  ;;  %1157 = vmatprep.mubr.msk.f32.mxu1 %vm1316_vm3, %v1317_v19 }
 0xa35   :  { %1216 = vmatprep.subr.bf16.mxu1 %v1314_v16 }
 0xb06   :  { %v456_v35 = vpop.f32.mrb[2].mxu1 }
 0xb07   :  { %v460_v36 = vadd.f32 %v456_v35, %v384_v34  ;;  %v1145_v37 = vpop.f32.mrb[3].mxu1 }
 0xb09   :  { %1280 = vtanh.f32 %v460_v36  ;;  %v1071_v39 = vmul.f32 -1.442695, %v460_v36 }
 0xb0b   :  { %1282 = vpow2.f32 %v1071_v39 }
 0xb13   :  { %v1281_v38 = vpop.eup %1280 }
 0xb14   :  { %470 = vrot.lane.b32.xlu1 %v1281_v38, %s1313_s1 }
 0xb15   :  { %v1283_v40 = vpop.eup %1282 }
 0xb16   :  { %v464_v41 = vadd.f32 1.0, %v1283_v40 }
 0xb18   :  { %1284 = vrcp.f32 %v464_v41 }
 0xb22   :  { %v1285_v42 = vpop.eup %1284 }
 0xb23   :  { %v468_v45 = vmul.f32 %v1285_v42, %v372_v26 }
 0xb86   :  { %v471_v43 = vpop.permute.xlu1 %470 }
 0xb87   :  { %v473_v44 = vmul.f32 %v1285_v42, %v471_v43 }
 0xb89   :  { %475 = vrot.lane.b32.xlu1 %v473_v44, %s1321_s24 }
 0xbfb   :  { %v476_v46 = vpop.permute.xlu1 %475 }
 0xbfc   :  { %v478_v47 = vadd.f32 %v476_v46, %v468_v45 }
 0xbfe   :  { %1286 = vtanh.f32 %v478_v47 }
 0xc08   :  { %v1287_v48 = vpop.eup %1286 }
 0xc09   :  { %481 = vrot.lane.b32.xlu0 %v1287_v48, %s1322_s25 }
 0xc0d   :  { %486 = vperm.xlu0 %1245, %v1352_v1  }
 0xc11   :  { %1246 = vset.pattern.permute.xlu0 %v1327_v8 }
 0xc7b   :  { %v482_v50 = vpop.permute.xlu0 %481 }
 0xc7c   :  { %v484_v51 = vmul.f32 %v1285_v42, %v482_v50  ;;  %v804_v50 = vld [vmem:[%s1526_s2 + $0x20] sm:$0xff] }
 0xc7e   :  { %492 = vrot.lane.b32.xlu1 %v484_v51, %s1320_s23  ;;  %v805_v51 = vld [vmem:[%s1526_s2 + $0x28] sm:$0xf] }
 0xc8c   :  { %v487_v53 = vpop.permute.xlu0 %486 }
 0xc8d   :  { %v489_v54 = vmul.f32 %v1358_v2, %v487_v53  ;;  %v1217_v53 = vpack.c.bf16 %v805_v51, %v804_v50 }
 0xc8f   :  { %v490_v55 = vadd.f32 %v1363_v3, %v489_v54 }
 0xcf0   :  { %v493_v52 = vpop.permute.xlu1 %492 }
 0xcf1   :  { %1151 = vmatmul.mubr.msk.f32.vlgmr.msra.gmra.mrb[4].mxu0 %vm61_vm4, %v493_v52  ;;  %v803_v52 = vld [vmem:[%s1526_s2 + $0x18] sm:$0xf] }
 0xcf2   :  { %1215 = vmatpush3.bf16.msk.msra.mxu0 %vm1378_vm2, %v1375_v17  ;;  %1164 = vmatprep.mubr.msk.f32.mxu0 %vm1316_vm3, %v1317_v19 }
 0xcf3   :  { %1174 = vmatprep.subr.mxu0 %v1317_v19 }
 0xdc4   :  { %v562_v56 = vpop.f32.mrb[4].mxu0 }
 0xdc5   :  { %v566_v57 = vadd.f32 %v562_v56, %v490_v55  ;;  %v1152_v58 = vpop.f32.mrb[5].mxu0  ;;  %v811_v55 = vld [vmem:[%s1527_s0] sm:$0xff] }
 0xdc7   :  { %1288 = vtanh.f32 %v566_v57  ;;  %v1074_v60 = vmul.f32 -1.442695, %v566_v57 }
 0xdc9   :  { %1290 = vpow2.f32 %v1074_v60 }
 0xdd1   :  { %v1289_v59 = vpop.eup %1288 }
 0xdd2   :  { %576 = vrot.lane.b32.xlu1 %v1289_v59, %s1313_s1  ;;  %v808_v59 = vld [vmem:[%s1526_s2 + $0x38] sm:$0xff] }
 0xdd3   :  { %v1291_v17 = vpop.eup %1290 }
 0xdd4   :  { %v570_v61 = vadd.f32 1.0, %v1291_v17  ;;  %v1221_v17 = vpack.c.bf16 %v808_v59, %v807_v18 }
 0xdd6   :  { %1292 = vrcp.f32 %v570_v61  ;;  %v809_v61 = vld [vmem:[%s1526_s2 + $0x40] sm:$0xff] }
 0xde0   :  { %v1293_v62 = vpop.eup %1292 }
 0xde1   :  { %v574_v4 = vmul.f32 %v1293_v62, %v478_v47 }
 0xe44   :  { %v577_v63 = vpop.permute.xlu1 %576 }
 0xe45   :  { %v579_v0 = vmul.f32 %v1293_v62, %v577_v63 }
 0xe47   :  { %581 = vrot.lane.b32.xlu1 %v579_v0, %s1321_s24 }
 0xeb9   :  { %v582_v5 = vpop.permute.xlu1 %581 }
 0xeba   :  { %v584_v6 = vadd.f32 %v582_v5, %v574_v4 }
 0xebc   :  { %1294 = vtanh.f32 %v584_v6 }
 0xec6   :  { %v1295_v7 = vpop.eup %1294 }
 0xec7   :  { %587 = vrot.lane.b32.xlu0 %v1295_v7, %s1322_s25 }
 0xecb   :  { %592 = vperm.xlu0 %1246, %v1352_v1  }
 0xecf   :  { %1247 = vset.pattern.permute.xlu0 %v1328_v33 }
 0xf39   :  { %v588_v9 = vpop.permute.xlu0 %587 }
 0xf3a   :  { %v590_v10 = vmul.f32 %v1293_v62, %v588_v9  ;;  %v1085_v62 = vld [vmem:[%s1526_s2 + $0x2] ss:$0 sm:$0xff] }
 0xf3c   :  { %598 = vrot.lane.b32.xlu1 %v590_v10, %s1320_s23 }
 0xf4a   :  { %v593_v12 = vpop.permute.xlu0 %592 }
 0xf4b   :  { %v595_v13 = vmul.f32 %v1358_v2, %v593_v12 }
 0xf4d   :  { %v596_v14 = vadd.f32 %v1363_v3, %v595_v13 }
 0xfae   :  { %v599_v11 = vpop.permute.xlu1 %598 }
 0xfaf   :  { %1158 = vmatmul.mubr.msk.f32.vlgmr.msra.gmra.mrb[4].mxu1 %vm61_vm4, %v599_v11 }
 0xfb0   :  { %1171 = vmatprep.mubr.msk.f32.mxu1 %vm1316_vm3, %v1317_v19  ;;  %1219 = vmatpush3.bf16.msk.msra.mxu1 %vm1378_vm2, %v1217_v53 }
 0xfb1   :  { %1220 = vmatprep.subr.bf16.mxu1 %v1314_v16 }
0x1082   :  { %v668_v15 = vpop.f32.mrb[4].mxu1 }
0x1083   :  { %v672_v20 = vadd.f32 %v668_v15, %v596_v14  ;;  %v1159_v21 = vpop.f32.mrb[5].mxu1 }
0x1085   :  { %1296 = vtanh.f32 %v672_v20  ;;  %v1077_v23 = vmul.f32 -1.442695, %v672_v20 }
0x1087   :  { %1298 = vpow2.f32 %v1077_v23 }
0x108f   :  { %v1297_v22 = vpop.eup %1296 }
0x1090   :  { %682 = vrot.lane.b32.xlu1 %v1297_v22, %s1313_s1 }
0x1091   :  { %v1299_v24 = vpop.eup %1298 }
0x1092   :  { %v676_v25 = vadd.f32 1.0, %v1299_v24 }
0x1094   :  { %1300 = vrcp.f32 %v676_v25 }
0x109e   :  { %v1301_v26 = vpop.eup %1300 }
0x109f   :  { %v680_v29 = vmul.f32 %v1301_v26, %v584_v6 }
0x1102   :  { %v683_v27 = vpop.permute.xlu1 %682 }
0x1103   :  { %v685_v28 = vmul.f32 %v1301_v26, %v683_v27 }
0x1105   :  { %687 = vrot.lane.b32.xlu1 %v685_v28, %s1321_s24 }
0x1177   :  { %v688_v30 = vpop.permute.xlu1 %687 }
0x1178   :  { %v690_v31 = vadd.f32 %v688_v30, %v680_v29 }
0x117a   :  { %1302 = vtanh.f32 %v690_v31 }
0x1184   :  { %v1303_v32 = vpop.eup %1302 }
0x1185   :  { %693 = vrot.lane.b32.xlu0 %v1303_v32, %s1322_s25 }
0x1189   :  { %698 = vperm.xlu0 %1247, %v1352_v1  }
0x11f7   :  { %v694_v34 = vpop.permute.xlu0 %693 }
0x11f8   :  { %v696_v35 = vmul.f32 %v1301_v26, %v694_v34 }
0x11fa   :  { %704 = vrot.lane.b32.xlu1 %v696_v35, %s1320_s23 }
0x1208   :  { %v699_v37 = vpop.permute.xlu0 %698 }
0x1209   :  { %v701_v38 = vmul.f32 %v1358_v2, %v699_v37 }
0x120b   :  { %v702_v39 = vadd.f32 %v1363_v3, %v701_v38 }
0x126c   :  { %v705_v36 = vpop.permute.xlu1 %704 }
0x126d   :  { %1165 = vmatmul.mubr.msk.f32.vlgmr.msra.gmra.mrb[6].mxu0 %vm61_vm4, %v705_v36 }
0x126e   :  { %1176 = vmatprep.mubr.msk.f32.mxu0 %vm1316_vm3, %v1317_v19  ;;  %1175 = vmatpush3.msk.msra.mxu0 %vm64_vm0, %v803_v52 }
0x1271   :  { %1177 = vmatmul.mubr.msk.f32.vlgmr.msra.gmra.mrb[8].mxu0 %vm890_vm5, %v811_v55 }
0x1340   :  { %v774_v40 = vpop.f32.mrb[6].mxu0 }
0x1341   :  { %v778_v41 = vadd.f32 %v774_v40, %v702_v39  ;;  %v1166_v42 = vpop.f32.mrb[7].mxu0 }
0x1343   :  { %1304 = vtanh.f32 %v778_v41  ;;  %v1080_v43 = vmul.f32 -1.442695, %v778_v41 }
0x1344   :  { %v963_v16 = vpop.f32.mrb[8].mxu0 }
0x1345   :  { %1306 = vpow2.f32 %v1080_v43  ;;  %v1178_v60 = vpop.f32.mrb[9].mxu0 }
0x134d   :  { %v1305_v1 = vpop.eup %1304 }
0x134e   :  { %788 = vrot.lane.b32.xlu1 %v1305_v1, %s1313_s1 }
0x134f   :  { %v1307_v44 = vpop.eup %1306 }
0x1350   :  { %v782_v45 = vadd.f32 1.0, %v1307_v44 }
0x1352   :  { %1308 = vrcp.f32 %v782_v45 }
0x135c   :  { %v1309_v46 = vpop.eup %1308 }
0x135d   :  { %v786_v2 = vmul.f32 %v1309_v46, %v690_v31 }
0x13c0   :  { %v789_v47 = vpop.permute.xlu1 %788 }
0x13c1   :  { %v791_v48 = vmul.f32 %v1309_v46, %v789_v47 }
0x13c3   :  { %793 = vrot.lane.b32.xlu1 %v791_v48, %s1321_s24 }
0x1435   :  { %v794_v49 = vpop.permute.xlu1 %793 }
0x1436   :  { %v796_v3 = vadd.f32 %v794_v49, %v786_v2 }
0x1438   :  { %1310 = vtanh.f32 %v796_v3 }
0x1442   :  { %v1311_v54 = vpop.eup %1310 }
0x1443   :  { %799 = vrot.lane.b32.xlu0 %v1311_v54, %s1322_s25 }
0x14b5   :  { %v800_v56 = vpop.permute.xlu0 %799 }
0x14b6   :  { %v802_v57 = vmul.f32 %v1309_v46, %v800_v56 }
0x14b8   :  { %813 = vrot.lane.b32.xlu1 %v802_v57, %s1320_s23 }
0x152a   :  { %v814_v58 = vpop.permute.xlu1 %813 }
0x152b   :  { %1172 = vmatmul.mubr.msk.f32.vlgmr.msra.gmra.mrb[6].mxu1 %vm61_vm4, %v814_v58 }
0x152c   :  { %1185 = vmatprep.mubr.msk.f32.mxu1 %vm1316_vm3, %v1317_v19  ;;  %1222 = vmatpush3.bf16.msra.mxu1 %v1221_v17 }
0x152d   :  { %1183 = vmatprep.subr.mxu1 %v1317_v19  ;;  %v1086_v19 = vld [vmem:[%s1526_s2 + $0x3] ss:$0 sm:$0xff] }
0x1530   :  { %1184 = vmatpush3.msra.mxu1 %v809_v61 }
0x15fe   :  { %v886_v63 = vpop.f32.mrb[6].mxu1 }
0x15ff   :  { %v964_v0 = vadd.f32 %v963_v16, %v886_v63  ;;  %v1173_v4 = vpop.f32.mrb[7].mxu1 }
0x1601   :  { %v971_v5 = vadd.f32 %v1085_v62, %v964_v0 }
0x1603   :  { %v972_v6 = vmax.f32 %v971_v5, 0.0 }
0x1605   :  { %1186 = vmatmul.mubr.msk.f32.vlgmr.msra.gmra.mrb[8].mxu1 %vm977_vm6, %v972_v6 }
0x16d8   :  { %v1047_v7 = vpop.f32.mrb[8].mxu1 }
0x16d9   :  { %v1048_v8 = vadd.f32 %v1086_v19, %v1047_v7  ;;  %v1187_v9 = vpop.f32.mrb[9].mxu1 }
0x16db   :  { %1052 = vst.msk [vmem:[%s1528_s3] sm:$0xff] %vm1051_vm7, %v1048_v8 }

</bundles_post_ra>
